<compile_context>
chip_gen: v6e
topology: v6e:2x2x1
jax: 0.10.0
libtpu: 0.0.40
codegen_flags: <defaults>
</compile_context>

<pallas_src>
import jax
import jax.numpy as jnp
from jax.experimental import pallas as pl
from jax.experimental.pallas import tpu as pltpu


def goalnet_kernel(x_ref, h0_ref, c0_ref, wih_ref, whh_ref, b_ref,
                   wfc_ref, bfc_ref,
                   y_ref, hn_ref, cn_ref,
                   h_all_ref):
    """LSTM recurrence + post-loop Linear, everything resident in VMEM.

    x_ref    : (T*B, I)   time-major, flattened input (f32)
    h0/c0    : (B, H)     initial hidden / cell state (f32)
    wih      : (I, 4H)    input->gates   (pre-transposed, bf16)
    whh      : (H, 4H)    hidden->gates  (pre-transposed, bf16)
    b        : (1, 4H)    bias_ih + bias_hh (f32)
    wfc      : (H, O)     fc weight (pre-transposed, bf16)
    bfc      : (1, O)     fc bias (f32)
    y_ref    : (T*B, O)   per-timestep output (f32)
    hn/cn    : (B, H)     final hidden / cell state (f32)
    h_all_ref: (T*B, H)   VMEM scratch: hidden state for every timestep
    """
    TB, _ = x_ref.shape
    B, H = h0_ref.shape
    T = TB // B                      # static Python int

    wih = wih_ref[...]               # bf16
    whh = whh_ref[...]               # bf16
    b = b_ref[...]                   # f32

    # ---- (2) One big MXU matmul for the input projection of all timesteps. --
    gx = jnp.dot(x_ref[...].astype(jnp.bfloat16), wih,
                 preferred_element_type=jnp.float32) + b        # (T*B, 4H) f32

    # ---- (3) Serial recurrence: only h @ Whh stays on the critical path. ----
    h = h0_ref[...]                  # (B, H) f32
    c = c0_ref[...]                  # (B, H) f32
    for t in range(T):               # T is small & static -> fully unrolled
        gates = gx[t * B:(t + 1) * B, :] + jnp.dot(
            h.astype(jnp.bfloat16), whh,
            preferred_element_type=jnp.float32)                 # (B, 4H) f32

        # PyTorch gate order (i, f, g, o); elementwise math strictly in f32.
        i_g = jax.nn.sigmoid(gates[:, 0 * H:1 * H])
        f_g = jax.nn.sigmoid(gates[:, 1 * H:2 * H])
        g_g = jnp.tanh(gates[:, 2 * H:3 * H])
        o_g = jax.nn.sigmoid(gates[:, 3 * H:4 * H])

        c = f_g * c + i_g * g_g
        h = o_g * jnp.tanh(c)

        h_all_ref[t * B:(t + 1) * B, :] = h   # static-slice store (cheap view)

    # ---- (4) Dropout = identity (eval mode); FC hoisted out of the loop. ----
    # TODO(synk): train-mode dropout (random mask via pltpu.prng_*) not emitted;
    # forward here matches eval-mode semantics.
    h_all = h_all_ref[...].astype(jnp.bfloat16)                 # (T*B, H)
    y_ref[...] = jnp.dot(h_all, wfc_ref[...],
                         preferred_element_type=jnp.float32) + bfc_ref[...]

    hn_ref[...] = h
    cn_ref[...] = c


def init_goalnet_params(key, input_size, hidden_size, output_size):
    """Deterministic params with PyTorch-style shapes."""
    k = 1.0 / jnp.sqrt(jnp.float32(hidden_size))
    keys = jax.random.split(key, 6)
    u = lambda kk, shape: jax.random.uniform(kk, shape, jnp.float32, -k, k)
    return {
        "weight_ih": u(keys[0], (4 * hidden_size, input_size)),
        "weight_hh": u(keys[1], (4 * hidden_size, hidden_size)),
        "bias_ih":   u(keys[2], (4 * hidden_size,)),
        "bias_hh":   u(keys[3], (4 * hidden_size,)),
        "fc_weight": u(keys[4], (output_size, hidden_size)),
        "fc_bias":   u(keys[5], (output_size,)),
    }


def goalnet_forward(x, params, hidden=None):
    """x: (B, T, I) float32 (batch_first, like the PyTorch module).

    Returns (y, (h_n, c_n)) with y: (B, T, O), h_n/c_n: (1, B, H).
    """
    B, T, I = x.shape
    H = params["weight_hh"].shape[1]
    O = params["fc_weight"].shape[0]

    if hidden is None:
        h0 = jnp.zeros((B, H), jnp.float32)
        c0 = jnp.zeros((B, H), jnp.float32)
    else:
        h0 = hidden[0].reshape(B, H).astype(jnp.float32)
        c0 = hidden[1].reshape(B, H).astype(jnp.float32)

    # Glue done in XLA (cheap at these sizes): time-major flatten, weight
    # pre-transpose, bf16 pre-cast of matmul weights.
    # TODO(synk): for large T*B stream time-chunks via a grid / emit_pipeline
    # instead of materializing the transposed copy in HBM.
    x2 = jnp.transpose(x, (1, 0, 2)).reshape(T * B, I).astype(jnp.float32)
    wih_t = params["weight_ih"].T.astype(jnp.bfloat16)                 # (I, 4H)
    whh_t = params["weight_hh"].T.astype(jnp.bfloat16)                 # (H, 4H)
    b = (params["bias_ih"] + params["bias_hh"]).reshape(1, 4 * H).astype(jnp.float32)
    wfc_t = params["fc_weight"].T.astype(jnp.bfloat16)                 # (H, O)
    bfc = params["fc_bias"].reshape(1, O).astype(jnp.float32)

    vspec = pl.BlockSpec(memory_space=pltpu.MemorySpace.VMEM)

    y2, h_n, c_n = pl.pallas_call(
        goalnet_kernel,
        out_shape=(
            jax.ShapeDtypeStruct((T * B, O), jnp.float32),
            jax.ShapeDtypeStruct((B, H), jnp.float32),
            jax.ShapeDtypeStruct((B, H), jnp.float32),
        ),
        in_specs=[vspec] * 8,
        out_specs=(vspec, vspec, vspec),
        scratch_shapes=[pltpu.VMEM((T * B, H), jnp.float32)],   # h_all
    )(x2, h0, c0, wih_t, whh_t, b, wfc_t, bfc)

    y = y2.reshape(T, B, O).transpose(1, 0, 2)     # back to (B, T, O)
    return y, (h_n[None, ...], c_n[None, ...])     # h_n/c_n: (1, B, H)


def goalnet_reference(x, params, hidden=None):
    """Pure-JAX reference with the same bf16-matmul / f32-gate math."""
    B, T, I = x.shape
    H = params["weight_hh"].shape[1]
    if hidden is None:
        h = jnp.zeros((B, H), jnp.float32)
        c = jnp.zeros((B, H), jnp.float32)
    else:
        h = hidden[0].reshape(B, H).astype(jnp.float32)
        c = hidden[1].reshape(B, H).astype(jnp.float32)

    wih_t = params["weight_ih"].T.astype(jnp.bfloat16)
    whh_t = params["weight_hh"].T.astype(jnp.bfloat16)
    b = (params["bias_ih"] + params["bias_hh"]).astype(jnp.float32)
    wfc_t = params["fc_weight"].T.astype(jnp.bfloat16)
    bfc = params["fc_bias"].astype(jnp.float32)

    ys = []
    for t in range(T):
        xt = x[:, t, :].astype(jnp.bfloat16)
        gates = (jnp.dot(xt, wih_t, preferred_element_type=jnp.float32)
                 + jnp.dot(h.astype(jnp.bfloat16), whh_t,
                           preferred_element_type=jnp.float32) + b)
        i_g = jax.nn.sigmoid(gates[:, 0 * H:1 * H])
        f_g = jax.nn.sigmoid(gates[:, 1 * H:2 * H])
        g_g = jnp.tanh(gates[:, 2 * H:3 * H])
        o_g = jax.nn.sigmoid(gates[:, 3 * H:4 * H])
        c = f_g * c + i_g * g_g
        h = o_g * jnp.tanh(c)
        ys.append(jnp.dot(h.astype(jnp.bfloat16), wfc_t,
                          preferred_element_type=jnp.float32) + bfc)
    y = jnp.stack(ys, axis=1)
    return y, (h[None, ...], c[None, ...])


if __name__ == "__main__":
    # Small shapes consistent with the module: batch=2, seq=8, input=16,
    # hidden=32, output=8.
    B, T, I, H, O = 2, 8, 16, 32, 8

    key = jax.random.PRNGKey(0)
    kx, kp = jax.random.split(key)
    x = jax.random.normal(kx, (B, T, I), jnp.float32)
    params = init_goalnet_params(kp, I, H, O)

    y, (h_n, c_n) = goalnet_forward(x, params)
    jax.block_until_ready((y, h_n, c_n))

    assert y.shape == (B, T, O)
    assert h_n.shape == (1, B, H) and c_n.shape == (1, B, H)
    assert bool(jnp.all(jnp.isfinite(y)))

    # Numerical sanity-check against a pure-JAX reference (same cast policy).
    y_ref, (h_ref, c_ref) = goalnet_reference(x, params)
    assert bool(jnp.allclose(y, y_ref, atol=2e-2, rtol=2e-2))
    assert bool(jnp.allclose(h_n, h_ref, atol=2e-2, rtol=2e-2))
    assert bool(jnp.allclose(c_n, c_ref, atol=2e-2, rtol=2e-2))

    print("KERNEL_OK")
</pallas_src>

<mosaic_0001>
module attributes {stable_mosaic.version = 11 : i64} {
  func.func @goalnet_kernel(%arg0: memref<16x16xf32, #tpu.memory_space<vmem>>, %arg1: memref<2x32xf32, #tpu.memory_space<vmem>>, %arg2: memref<2x32xf32, #tpu.memory_space<vmem>>, %arg3: memref<16x128xbf16, #tpu.memory_space<vmem>>, %arg4: memref<32x128xbf16, #tpu.memory_space<vmem>>, %arg5: memref<1x128xf32, #tpu.memory_space<vmem>>, %arg6: memref<32x8xbf16, #tpu.memory_space<vmem>>, %arg7: memref<1x8xf32, #tpu.memory_space<vmem>>, %arg8: memref<16x8xf32, #tpu.memory_space<vmem>>, %arg9: memref<2x32xf32, #tpu.memory_space<vmem>>, %arg10: memref<2x32xf32, #tpu.memory_space<vmem>>, %arg11: memref<16x32xf32, #tpu.memory_space<vmem>>) attributes {dimension_semantics = [], scalar_prefetch = 0 : i64, scratch_operands = 1 : i64, tpu.core_type = #tpu.core_type<tc>} {
    %c0 = arith.constant 0 : index
    %c0_0 = arith.constant 0 : index
    %0 = vector.load %arg3[%c0, %c0_0] : memref<16x128xbf16, #tpu.memory_space<vmem>>, vector<16x128xbf16>
    %c0_1 = arith.constant 0 : index
    %c0_2 = arith.constant 0 : index
    %1 = vector.load %arg4[%c0_1, %c0_2] : memref<32x128xbf16, #tpu.memory_space<vmem>>, vector<32x128xbf16>
    %c0_3 = arith.constant 0 : index
    %c0_4 = arith.constant 0 : index
    %2 = vector.load %arg5[%c0_3, %c0_4] : memref<1x128xf32, #tpu.memory_space<vmem>>, vector<1x128xf32>
    %c0_5 = arith.constant 0 : index
    %c0_6 = arith.constant 0 : index
    %3 = vector.load %arg0[%c0_5, %c0_6] : memref<16x16xf32, #tpu.memory_space<vmem>>, vector<16x16xf32>
    %4 = arith.truncf %3 : vector<16x16xf32> to vector<16x16xbf16>
    %cst = arith.constant dense<0.000000e+00> : vector<16x128xf32>
    %5 = tpu.matmul %4, %0, %cst {dimension_numbers = #tpu.dot_dimension_numbers<[1], [0], [0], [1], [0, 0, 1, 1], [], []>} : vector<16x16xbf16>, vector<16x128xbf16>, vector<16x128xf32> -> vector<16x128xf32>
    %6 = vector.broadcast %2 : vector<1x128xf32> to vector<16x128xf32>
    %7 = arith.addf %5, %6 : vector<16x128xf32>
    %c0_7 = arith.constant 0 : index
    %c0_8 = arith.constant 0 : index
    %8 = vector.load %arg1[%c0_7, %c0_8] : memref<2x32xf32, #tpu.memory_space<vmem>>, vector<2x32xf32>
    %c0_9 = arith.constant 0 : index
    %c0_10 = arith.constant 0 : index
    %9 = vector.load %arg2[%c0_9, %c0_10] : memref<2x32xf32, #tpu.memory_space<vmem>>, vector<2x32xf32>
    %10 = vector.extract_strided_slice %7 {offsets = [0, 0], sizes = [2, 128], strides = [1, 1]} : vector<16x128xf32> to vector<2x128xf32>
    %11 = arith.truncf %8 : vector<2x32xf32> to vector<2x32xbf16>
    %cst_11 = arith.constant dense<0.000000e+00> : vector<2x128xf32>
    %12 = tpu.matmul %11, %1, %cst_11 {dimension_numbers = #tpu.dot_dimension_numbers<[1], [0], [0], [1], [0, 0, 1, 1], [], []>} : vector<2x32xbf16>, vector<32x128xbf16>, vector<2x128xf32> -> vector<2x128xf32>
    %13 = arith.addf %10, %12 : vector<2x128xf32>
    %14 = vector.extract_strided_slice %13 {offsets = [0, 0], sizes = [2, 32], strides = [1, 1]} : vector<2x128xf32> to vector<2x32xf32>
    %15 = arith.negf %14 : vector<2x32xf32>
    %16 = math.exp %15 : vector<2x32xf32>
    %cst_12 = arith.constant 1.000000e+00 : f32
    %17 = vector.broadcast %cst_12 : f32 to vector<2x32xf32>
    %18 = arith.addf %17, %16 : vector<2x32xf32>
    %19 = arith.divf %17, %18 : vector<2x32xf32>
    %20 = vector.extract_strided_slice %13 {offsets = [0, 32], sizes = [2, 32], strides = [1, 1]} : vector<2x128xf32> to vector<2x32xf32>
    %21 = arith.negf %20 : vector<2x32xf32>
    %22 = math.exp %21 : vector<2x32xf32>
    %cst_13 = arith.constant 1.000000e+00 : f32
    %23 = vector.broadcast %cst_13 : f32 to vector<2x32xf32>
    %24 = arith.addf %23, %22 : vector<2x32xf32>
    %25 = arith.divf %23, %24 : vector<2x32xf32>
    %26 = vector.extract_strided_slice %13 {offsets = [0, 64], sizes = [2, 32], strides = [1, 1]} : vector<2x128xf32> to vector<2x32xf32>
    %27 = math.tanh %26 : vector<2x32xf32>
    %28 = vector.extract_strided_slice %13 {offsets = [0, 96], sizes = [2, 32], strides = [1, 1]} : vector<2x128xf32> to vector<2x32xf32>
    %29 = arith.negf %28 : vector<2x32xf32>
    %30 = math.exp %29 : vector<2x32xf32>
    %cst_14 = arith.constant 1.000000e+00 : f32
    %31 = vector.broadcast %cst_14 : f32 to vector<2x32xf32>
    %32 = arith.addf %31, %30 : vector<2x32xf32>
    %33 = arith.divf %31, %32 : vector<2x32xf32>
    %34 = arith.mulf %25, %9 : vector<2x32xf32>
    %35 = arith.mulf %19, %27 : vector<2x32xf32>
    %36 = arith.addf %34, %35 : vector<2x32xf32>
    %37 = math.tanh %36 : vector<2x32xf32>
    %38 = arith.mulf %33, %37 : vector<2x32xf32>
    %c0_15 = arith.constant 0 : index
    %c0_16 = arith.constant 0 : index
    %39 = vector.load %arg11[%c0_15, %c0_16] : memref<16x32xf32, #tpu.memory_space<vmem>>, vector<2x32xf32>
    tpu.vector_store %arg11[%c0_15, %c0_16], %38 {strides = array<i32>} : memref<16x32xf32, #tpu.memory_space<vmem>>, vector<2x32xf32>,
    %40 = vector.extract_strided_slice %7 {offsets = [2, 0], sizes = [2, 128], strides = [1, 1]} : vector<16x128xf32> to vector<2x128xf32>
    %41 = arith.truncf %38 : vector<2x32xf32> to vector<2x32xbf16>
    %cst_17 = arith.constant dense<0.000000e+00> : vector<2x128xf32>
    %42 = tpu.matmul %41, %1, %cst_17 {dimension_numbers = #tpu.dot_dimension_numbers<[1], [0], [0], [1], [0, 0, 1, 1], [], []>} : vector<2x32xbf16>, vector<32x128xbf16>, vector<2x128xf32> -> vector<2x128xf32>
    %43 = arith.addf %40, %42 : vector<2x128xf32>
    %44 = vector.extract_strided_slice %43 {offsets = [0, 0], sizes = [2, 32], strides = [1, 1]} : vector<2x128xf32> to vector<2x32xf32>
    %45 = arith.negf %44 : vector<2x32xf32>
    %46 = math.exp %45 : vector<2x32xf32>
    %cst_18 = arith.constant 1.000000e+00 : f32
    %47 = vector.broadcast %cst_18 : f32 to vector<2x32xf32>
    %48 = arith.addf %47, %46 : vector<2x32xf32>
    %49 = arith.divf %47, %48 : vector<2x32xf32>
    %50 = vector.extract_strided_slice %43 {offsets = [0, 32], sizes = [2, 32], strides = [1, 1]} : vector<2x128xf32> to vector<2x32xf32>
    %51 = arith.negf %50 : vector<2x32xf32>
    %52 = math.exp %51 : vector<2x32xf32>
    %cst_19 = arith.constant 1.000000e+00 : f32
    %53 = vector.broadcast %cst_19 : f32 to vector<2x32xf32>
    %54 = arith.addf %53, %52 : vector<2x32xf32>
    %55 = arith.divf %53, %54 : vector<2x32xf32>
    %56 = vector.extract_strided_slice %43 {offsets = [0, 64], sizes = [2, 32], strides = [1, 1]} : vector<2x128xf32> to vector<2x32xf32>
    %57 = math.tanh %56 : vector<2x32xf32>
    %58 = vector.extract_strided_slice %43 {offsets = [0, 96], sizes = [2, 32], strides = [1, 1]} : vector<2x128xf32> to vector<2x32xf32>
    %59 = arith.negf %58 : vector<2x32xf32>
    %60 = math.exp %59 : vector<2x32xf32>
    %cst_20 = arith.constant 1.000000e+00 : f32
    %61 = vector.broadcast %cst_20 : f32 to vector<2x32xf32>
    %62 = arith.addf %61, %60 : vector<2x32xf32>
    %63 = arith.divf %61, %62 : vector<2x32xf32>
    %64 = arith.mulf %55, %36 : vector<2x32xf32>
    %65 = arith.mulf %49, %57 : vector<2x32xf32>
    %66 = arith.addf %64, %65 : vector<2x32xf32>
    %67 = math.tanh %66 : vector<2x32xf32>
    %68 = arith.mulf %63, %67 : vector<2x32xf32>
    %c2 = arith.constant 2 : index
    %c0_21 = arith.constant 0 : index
    %69 = vector.load %arg11[%c2, %c0_21] : memref<16x32xf32, #tpu.memory_space<vmem>>, vector<2x32xf32>
    tpu.vector_store %arg11[%c2, %c0_21], %68 {strides = array<i32>} : memref<16x32xf32, #tpu.memory_space<vmem>>, vector<2x32xf32>,
    %70 = vector.extract_strided_slice %7 {offsets = [4, 0], sizes = [2, 128], strides = [1, 1]} : vector<16x128xf32> to vector<2x128xf32>
    %71 = arith.truncf %68 : vector<2x32xf32> to vector<2x32xbf16>
    %cst_22 = arith.constant dense<0.000000e+00> : vector<2x128xf32>
    %72 = tpu.matmul %71, %1, %cst_22 {dimension_numbers = #tpu.dot_dimension_numbers<[1], [0], [0], [1], [0, 0, 1, 1], [], []>} : vector<2x32xbf16>, vector<32x128xbf16>, vector<2x128xf32> -> vector<2x128xf32>
    %73 = arith.addf %70, %72 : vector<2x128xf32>
    %74 = vector.extract_strided_slice %73 {offsets = [0, 0], sizes = [2, 32], strides = [1, 1]} : vector<2x128xf32> to vector<2x32xf32>
    %75 = arith.negf %74 : vector<2x32xf32>
    %76 = math.exp %75 : vector<2x32xf32>
    %cst_23 = arith.constant 1.000000e+00 : f32
    %77 = vector.broadcast %cst_23 : f32 to vector<2x32xf32>
    %78 = arith.addf %77, %76 : vector<2x32xf32>
    %79 = arith.divf %77, %78 : vector<2x32xf32>
    %80 = vector.extract_strided_slice %73 {offsets = [0, 32], sizes = [2, 32], strides = [1, 1]} : vector<2x128xf32> to vector<2x32xf32>
    %81 = arith.negf %80 : vector<2x32xf32>
    %82 = math.exp %81 : vector<2x32xf32>
    %cst_24 = arith.constant 1.000000e+00 : f32
    %83 = vector.broadcast %cst_24 : f32 to vector<2x32xf32>
    %84 = arith.addf %83, %82 : vector<2x32xf32>
    %85 = arith.divf %83, %84 : vector<2x32xf32>
    %86 = vector.extract_strided_slice %73 {offsets = [0, 64], sizes = [2, 32], strides = [1, 1]} : vector<2x128xf32> to vector<2x32xf32>
    %87 = math.tanh %86 : vector<2x32xf32>
    %88 = vector.extract_strided_slice %73 {offsets = [0, 96], sizes = [2, 32], strides = [1, 1]} : vector<2x128xf32> to vector<2x32xf32>
    %89 = arith.negf %88 : vector<2x32xf32>
    %90 = math.exp %89 : vector<2x32xf32>
    %cst_25 = arith.constant 1.000000e+00 : f32
    %91 = vector.broadcast %cst_25 : f32 to vector<2x32xf32>
    %92 = arith.addf %91, %90 : vector<2x32xf32>
    %93 = arith.divf %91, %92 : vector<2x32xf32>
    %94 = arith.mulf %85, %66 : vector<2x32xf32>
    %95 = arith.mulf %79, %87 : vector<2x32xf32>
    %96 = arith.addf %94, %95 : vector<2x32xf32>
    %97 = math.tanh %96 : vector<2x32xf32>
    %98 = arith.mulf %93, %97 : vector<2x32xf32>
    %c4 = arith.constant 4 : index
    %c0_26 = arith.constant 0 : index
    %99 = vector.load %arg11[%c4, %c0_26] : memref<16x32xf32, #tpu.memory_space<vmem>>, vector<2x32xf32>
    tpu.vector_store %arg11[%c4, %c0_26], %98 {strides = array<i32>} : memref<16x32xf32, #tpu.memory_space<vmem>>, vector<2x32xf32>,
    %100 = vector.extract_strided_slice %7 {offsets = [6, 0], sizes = [2, 128], strides = [1, 1]} : vector<16x128xf32> to vector<2x128xf32>
    %101 = arith.truncf %98 : vector<2x32xf32> to vector<2x32xbf16>
    %cst_27 = arith.constant dense<0.000000e+00> : vector<2x128xf32>
    %102 = tpu.matmul %101, %1, %cst_27 {dimension_numbers = #tpu.dot_dimension_numbers<[1], [0], [0], [1], [0, 0, 1, 1], [], []>} : vector<2x32xbf16>, vector<32x128xbf16>, vector<2x128xf32> -> vector<2x128xf32>
    %103 = arith.addf %100, %102 : vector<2x128xf32>
    %104 = vector.extract_strided_slice %103 {offsets = [0, 0], sizes = [2, 32], strides = [1, 1]} : vector<2x128xf32> to vector<2x32xf32>
    %105 = arith.negf %104 : vector<2x32xf32>
    %106 = math.exp %105 : vector<2x32xf32>
    %cst_28 = arith.constant 1.000000e+00 : f32
    %107 = vector.broadcast %cst_28 : f32 to vector<2x32xf32>
    %108 = arith.addf %107, %106 : vector<2x32xf32>
    %109 = arith.divf %107, %108 : vector<2x32xf32>
    %110 = vector.extract_strided_slice %103 {offsets = [0, 32], sizes = [2, 32], strides = [1, 1]} : vector<2x128xf32> to vector<2x32xf32>
    %111 = arith.negf %110 : vector<2x32xf32>
    %112 = math.exp %111 : vector<2x32xf32>
    %cst_29 = arith.constant 1.000000e+00 : f32
    %113 = vector.broadcast %cst_29 : f32 to vector<2x32xf32>
    %114 = arith.addf %113, %112 : vector<2x32xf32>
    %115 = arith.divf %113, %114 : vector<2x32xf32>
    %116 = vector.extract_strided_slice %103 {offsets = [0, 64], sizes = [2, 32], strides = [1, 1]} : vector<2x128xf32> to vector<2x32xf32>
    %117 = math.tanh %116 : vector<2x32xf32>
    %118 = vector.extract_strided_slice %103 {offsets = [0, 96], sizes = [2, 32], strides = [1, 1]} : vector<2x128xf32> to vector<2x32xf32>
    %119 = arith.negf %118 : vector<2x32xf32>
    %120 = math.exp %119 : vector<2x32xf32>
    %cst_30 = arith.constant 1.000000e+00 : f32
    %121 = vector.broadcast %cst_30 : f32 to vector<2x32xf32>
    %122 = arith.addf %121, %120 : vector<2x32xf32>
    %123 = arith.divf %121, %122 : vector<2x32xf32>
    %124 = arith.mulf %115, %96 : vector<2x32xf32>
    %125 = arith.mulf %109, %117 : vector<2x32xf32>
    %126 = arith.addf %124, %125 : vector<2x32xf32>
    %127 = math.tanh %126 : vector<2x32xf32>
    %128 = arith.mulf %123, %127 : vector<2x32xf32>
    %c6 = arith.constant 6 : index
    %c0_31 = arith.constant 0 : index
    %129 = vector.load %arg11[%c6, %c0_31] : memref<16x32xf32, #tpu.memory_space<vmem>>, vector<2x32xf32>
    tpu.vector_store %arg11[%c6, %c0_31], %128 {strides = array<i32>} : memref<16x32xf32, #tpu.memory_space<vmem>>, vector<2x32xf32>,
    %130 = vector.extract_strided_slice %7 {offsets = [8, 0], sizes = [2, 128], strides = [1, 1]} : vector<16x128xf32> to vector<2x128xf32>
    %131 = arith.truncf %128 : vector<2x32xf32> to vector<2x32xbf16>
    %cst_32 = arith.constant dense<0.000000e+00> : vector<2x128xf32>
    %132 = tpu.matmul %131, %1, %cst_32 {dimension_numbers = #tpu.dot_dimension_numbers<[1], [0], [0], [1], [0, 0, 1, 1], [], []>} : vector<2x32xbf16>, vector<32x128xbf16>, vector<2x128xf32> -> vector<2x128xf32>
    %133 = arith.addf %130, %132 : vector<2x128xf32>
    %134 = vector.extract_strided_slice %133 {offsets = [0, 0], sizes = [2, 32], strides = [1, 1]} : vector<2x128xf32> to vector<2x32xf32>
    %135 = arith.negf %134 : vector<2x32xf32>
    %136 = math.exp %135 : vector<2x32xf32>
    %cst_33 = arith.constant 1.000000e+00 : f32
    %137 = vector.broadcast %cst_33 : f32 to vector<2x32xf32>
    %138 = arith.addf %137, %136 : vector<2x32xf32>
    %139 = arith.divf %137, %138 : vector<2x32xf32>
    %140 = vector.extract_strided_slice %133 {offsets = [0, 32], sizes = [2, 32], strides = [1, 1]} : vector<2x128xf32> to vector<2x32xf32>
    %141 = arith.negf %140 : vector<2x32xf32>
    %142 = math.exp %141 : vector<2x32xf32>
    %cst_34 = arith.constant 1.000000e+00 : f32
    %143 = vector.broadcast %cst_34 : f32 to vector<2x32xf32>
    %144 = arith.addf %143, %142 : vector<2x32xf32>
    %145 = arith.divf %143, %144 : vector<2x32xf32>
    %146 = vector.extract_strided_slice %133 {offsets = [0, 64], sizes = [2, 32], strides = [1, 1]} : vector<2x128xf32> to vector<2x32xf32>
    %147 = math.tanh %146 : vector<2x32xf32>
    %148 = vector.extract_strided_slice %133 {offsets = [0, 96], sizes = [2, 32], strides = [1, 1]} : vector<2x128xf32> to vector<2x32xf32>
    %149 = arith.negf %148 : vector<2x32xf32>
    %150 = math.exp %149 : vector<2x32xf32>
    %cst_35 = arith.constant 1.000000e+00 : f32
    %151 = vector.broadcast %cst_35 : f32 to vector<2x32xf32>
    %152 = arith.addf %151, %150 : vector<2x32xf32>
    %153 = arith.divf %151, %152 : vector<2x32xf32>
    %154 = arith.mulf %145, %126 : vector<2x32xf32>
    %155 = arith.mulf %139, %147 : vector<2x32xf32>
    %156 = arith.addf %154, %155 : vector<2x32xf32>
    %157 = math.tanh %156 : vector<2x32xf32>
    %158 = arith.mulf %153, %157 : vector<2x32xf32>
    %c8 = arith.constant 8 : index
    %c0_36 = arith.constant 0 : index
    %159 = vector.load %arg11[%c8, %c0_36] : memref<16x32xf32, #tpu.memory_space<vmem>>, vector<2x32xf32>
    tpu.vector_store %arg11[%c8, %c0_36], %158 {strides = array<i32>} : memref<16x32xf32, #tpu.memory_space<vmem>>, vector<2x32xf32>,
    %160 = vector.extract_strided_slice %7 {offsets = [10, 0], sizes = [2, 128], strides = [1, 1]} : vector<16x128xf32> to vector<2x128xf32>
    %161 = arith.truncf %158 : vector<2x32xf32> to vector<2x32xbf16>
    %cst_37 = arith.constant dense<0.000000e+00> : vector<2x128xf32>
    %162 = tpu.matmul %161, %1, %cst_37 {dimension_numbers = #tpu.dot_dimension_numbers<[1], [0], [0], [1], [0, 0, 1, 1], [], []>} : vector<2x32xbf16>, vector<32x128xbf16>, vector<2x128xf32> -> vector<2x128xf32>
    %163 = arith.addf %160, %162 : vector<2x128xf32>
    %164 = vector.extract_strided_slice %163 {offsets = [0, 0], sizes = [2, 32], strides = [1, 1]} : vector<2x128xf32> to vector<2x32xf32>
    %165 = arith.negf %164 : vector<2x32xf32>
    %166 = math.exp %165 : vector<2x32xf32>
    %cst_38 = arith.constant 1.000000e+00 : f32
    %167 = vector.broadcast %cst_38 : f32 to vector<2x32xf32>
    %168 = arith.addf %167, %166 : vector<2x32xf32>
    %169 = arith.divf %167, %168 : vector<2x32xf32>
    %170 = vector.extract_strided_slice %163 {offsets = [0, 32], sizes = [2, 32], strides = [1, 1]} : vector<2x128xf32> to vector<2x32xf32>
    %171 = arith.negf %170 : vector<2x32xf32>
    %172 = math.exp %171 : vector<2x32xf32>
    %cst_39 = arith.constant 1.000000e+00 : f32
    %173 = vector.broadcast %cst_39 : f32 to vector<2x32xf32>
    %174 = arith.addf %173, %172 : vector<2x32xf32>
    %175 = arith.divf %173, %174 : vector<2x32xf32>
    %176 = vector.extract_strided_slice %163 {offsets = [0, 64], sizes = [2, 32], strides = [1, 1]} : vector<2x128xf32> to vector<2x32xf32>
    %177 = math.tanh %176 : vector<2x32xf32>
    %178 = vector.extract_strided_slice %163 {offsets = [0, 96], sizes = [2, 32], strides = [1, 1]} : vector<2x128xf32> to vector<2x32xf32>
    %179 = arith.negf %178 : vector<2x32xf32>
    %180 = math.exp %179 : vector<2x32xf32>
    %cst_40 = arith.constant 1.000000e+00 : f32
    %181 = vector.broadcast %cst_40 : f32 to vector<2x32xf32>
    %182 = arith.addf %181, %180 : vector<2x32xf32>
    %183 = arith.divf %181, %182 : vector<2x32xf32>
    %184 = arith.mulf %175, %156 : vector<2x32xf32>
    %185 = arith.mulf %169, %177 : vector<2x32xf32>
    %186 = arith.addf %184, %185 : vector<2x32xf32>
    %187 = math.tanh %186 : vector<2x32xf32>
    %188 = arith.mulf %183, %187 : vector<2x32xf32>
    %c10 = arith.constant 10 : index
    %c0_41 = arith.constant 0 : index
    %189 = vector.load %arg11[%c10, %c0_41] : memref<16x32xf32, #tpu.memory_space<vmem>>, vector<2x32xf32>
    tpu.vector_store %arg11[%c10, %c0_41], %188 {strides = array<i32>} : memref<16x32xf32, #tpu.memory_space<vmem>>, vector<2x32xf32>,
    %190 = vector.extract_strided_slice %7 {offsets = [12, 0], sizes = [2, 128], strides = [1, 1]} : vector<16x128xf32> to vector<2x128xf32>
    %191 = arith.truncf %188 : vector<2x32xf32> to vector<2x32xbf16>
    %cst_42 = arith.constant dense<0.000000e+00> : vector<2x128xf32>
    %192 = tpu.matmul %191, %1, %cst_42 {dimension_numbers = #tpu.dot_dimension_numbers<[1], [0], [0], [1], [0, 0, 1, 1], [], []>} : vector<2x32xbf16>, vector<32x128xbf16>, vector<2x128xf32> -> vector<2x128xf32>
    %193 = arith.addf %190, %192 : vector<2x128xf32>
    %194 = vector.extract_strided_slice %193 {offsets = [0, 0], sizes = [2, 32], strides = [1, 1]} : vector<2x128xf32> to vector<2x32xf32>
    %195 = arith.negf %194 : vector<2x32xf32>
    %196 = math.exp %195 : vector<2x32xf32>
    %cst_43 = arith.constant 1.000000e+00 : f32
    %197 = vector.broadcast %cst_43 : f32 to vector<2x32xf32>
    %198 = arith.addf %197, %196 : vector<2x32xf32>
    %199 = arith.divf %197, %198 : vector<2x32xf32>
    %200 = vector.extract_strided_slice %193 {offsets = [0, 32], sizes = [2, 32], strides = [1, 1]} : vector<2x128xf32> to vector<2x32xf32>
    %201 = arith.negf %200 : vector<2x32xf32>
    %202 = math.exp %201 : vector<2x32xf32>
    %cst_44 = arith.constant 1.000000e+00 : f32
    %203 = vector.broadcast %cst_44 : f32 to vector<2x32xf32>
    %204 = arith.addf %203, %202 : vector<2x32xf32>
    %205 = arith.divf %203, %204 : vector<2x32xf32>
    %206 = vector.extract_strided_slice %193 {offsets = [0, 64], sizes = [2, 32], strides = [1, 1]} : vector<2x128xf32> to vector<2x32xf32>
    %207 = math.tanh %206 : vector<2x32xf32>
    %208 = vector.extract_strided_slice %193 {offsets = [0, 96], sizes = [2, 32], strides = [1, 1]} : vector<2x128xf32> to vector<2x32xf32>
    %209 = arith.negf %208 : vector<2x32xf32>
    %210 = math.exp %209 : vector<2x32xf32>
    %cst_45 = arith.constant 1.000000e+00 : f32
    %211 = vector.broadcast %cst_45 : f32 to vector<2x32xf32>
    %212 = arith.addf %211, %210 : vector<2x32xf32>
    %213 = arith.divf %211, %212 : vector<2x32xf32>
    %214 = arith.mulf %205, %186 : vector<2x32xf32>
    %215 = arith.mulf %199, %207 : vector<2x32xf32>
    %216 = arith.addf %214, %215 : vector<2x32xf32>
    %217 = math.tanh %216 : vector<2x32xf32>
    %218 = arith.mulf %213, %217 : vector<2x32xf32>
    %c12 = arith.constant 12 : index
    %c0_46 = arith.constant 0 : index
    %219 = vector.load %arg11[%c12, %c0_46] : memref<16x32xf32, #tpu.memory_space<vmem>>, vector<2x32xf32>
    tpu.vector_store %arg11[%c12, %c0_46], %218 {strides = array<i32>} : memref<16x32xf32, #tpu.memory_space<vmem>>, vector<2x32xf32>,
    %220 = vector.extract_strided_slice %7 {offsets = [14, 0], sizes = [2, 128], strides = [1, 1]} : vector<16x128xf32> to vector<2x128xf32>
    %221 = arith.truncf %218 : vector<2x32xf32> to vector<2x32xbf16>
    %cst_47 = arith.constant dense<0.000000e+00> : vector<2x128xf32>
    %222 = tpu.matmul %221, %1, %cst_47 {dimension_numbers = #tpu.dot_dimension_numbers<[1], [0], [0], [1], [0, 0, 1, 1], [], []>} : vector<2x32xbf16>, vector<32x128xbf16>, vector<2x128xf32> -> vector<2x128xf32>
    %223 = arith.addf %220, %222 : vector<2x128xf32>
    %224 = vector.extract_strided_slice %223 {offsets = [0, 0], sizes = [2, 32], strides = [1, 1]} : vector<2x128xf32> to vector<2x32xf32>
    %225 = arith.negf %224 : vector<2x32xf32>
    %226 = math.exp %225 : vector<2x32xf32>
    %cst_48 = arith.constant 1.000000e+00 : f32
    %227 = vector.broadcast %cst_48 : f32 to vector<2x32xf32>
    %228 = arith.addf %227, %226 : vector<2x32xf32>
    %229 = arith.divf %227, %228 : vector<2x32xf32>
    %230 = vector.extract_strided_slice %223 {offsets = [0, 32], sizes = [2, 32], strides = [1, 1]} : vector<2x128xf32> to vector<2x32xf32>
    %231 = arith.negf %230 : vector<2x32xf32>
    %232 = math.exp %231 : vector<2x32xf32>
    %cst_49 = arith.constant 1.000000e+00 : f32
    %233 = vector.broadcast %cst_49 : f32 to vector<2x32xf32>
    %234 = arith.addf %233, %232 : vector<2x32xf32>
    %235 = arith.divf %233, %234 : vector<2x32xf32>
    %236 = vector.extract_strided_slice %223 {offsets = [0, 64], sizes = [2, 32], strides = [1, 1]} : vector<2x128xf32> to vector<2x32xf32>
    %237 = math.tanh %236 : vector<2x32xf32>
    %238 = vector.extract_strided_slice %223 {offsets = [0, 96], sizes = [2, 32], strides = [1, 1]} : vector<2x128xf32> to vector<2x32xf32>
    %239 = arith.negf %238 : vector<2x32xf32>
    %240 = math.exp %239 : vector<2x32xf32>
    %cst_50 = arith.constant 1.000000e+00 : f32
    %241 = vector.broadcast %cst_50 : f32 to vector<2x32xf32>
    %242 = arith.addf %241, %240 : vector<2x32xf32>
    %243 = arith.divf %241, %242 : vector<2x32xf32>
    %244 = arith.mulf %235, %216 : vector<2x32xf32>
    %245 = arith.mulf %229, %237 : vector<2x32xf32>
    %246 = arith.addf %244, %245 : vector<2x32xf32>
    %247 = math.tanh %246 : vector<2x32xf32>
    %248 = arith.mulf %243, %247 : vector<2x32xf32>
    %c14 = arith.constant 14 : index
    %c0_51 = arith.constant 0 : index
    %249 = vector.load %arg11[%c14, %c0_51] : memref<16x32xf32, #tpu.memory_space<vmem>>, vector<2x32xf32>
    tpu.vector_store %arg11[%c14, %c0_51], %248 {strides = array<i32>} : memref<16x32xf32, #tpu.memory_space<vmem>>, vector<2x32xf32>,
    %c0_52 = arith.constant 0 : index
    %c0_53 = arith.constant 0 : index
    %250 = vector.load %arg11[%c0_52, %c0_53] : memref<16x32xf32, #tpu.memory_space<vmem>>, vector<16x32xf32>
    %251 = arith.truncf %250 : vector<16x32xf32> to vector<16x32xbf16>
    %c0_54 = arith.constant 0 : index
    %c0_55 = arith.constant 0 : index
    %252 = vector.load %arg6[%c0_54, %c0_55] : memref<32x8xbf16, #tpu.memory_space<vmem>>, vector<32x8xbf16>
    %cst_56 = arith.constant dense<0.000000e+00> : vector<16x8xf32>
    %253 = tpu.matmul %251, %252, %cst_56 {dimension_numbers = #tpu.dot_dimension_numbers<[1], [0], [0], [1], [0, 0, 1, 1], [], []>} : vector<16x32xbf16>, vector<32x8xbf16>, vector<16x8xf32> -> vector<16x8xf32>
    %c0_57 = arith.constant 0 : index
    %c0_58 = arith.constant 0 : index
    %254 = vector.load %arg7[%c0_57, %c0_58] : memref<1x8xf32, #tpu.memory_space<vmem>>, vector<1x8xf32>
    %255 = vector.broadcast %254 : vector<1x8xf32> to vector<16x8xf32>
    %256 = arith.addf %253, %255 : vector<16x8xf32>
    %c0_59 = arith.constant 0 : index
    %c0_60 = arith.constant 0 : index
    %257 = vector.load %arg8[%c0_59, %c0_60] : memref<16x8xf32, #tpu.memory_space<vmem>>, vector<16x8xf32>
    tpu.vector_store %arg8[%c0_59, %c0_60], %256 {strides = array<i32>} : memref<16x8xf32, #tpu.memory_space<vmem>>, vector<16x8xf32>,
    %c0_61 = arith.constant 0 : index
    %c0_62 = arith.constant 0 : index
    %258 = vector.load %arg9[%c0_61, %c0_62] : memref<2x32xf32, #tpu.memory_space<vmem>>, vector<2x32xf32>
    tpu.vector_store %arg9[%c0_61, %c0_62], %248 {strides = array<i32>} : memref<2x32xf32, #tpu.memory_space<vmem>>, vector<2x32xf32>,
    %c0_63 = arith.constant 0 : index
    %c0_64 = arith.constant 0 : index
    %259 = vector.load %arg10[%c0_63, %c0_64] : memref<2x32xf32, #tpu.memory_space<vmem>>, vector<2x32xf32>
    tpu.vector_store %arg10[%c0_63, %c0_64], %246 {strides = array<i32>} : memref<2x32xf32, #tpu.memory_space<vmem>>, vector<2x32xf32>,
    return
  }
}

</mosaic_0001>

<bundles_post_ra>
// kernel: tpu_custom_call.1
= control target key start
LH: loop header
LB: loop body
LE: loop exit
PB: predicated region body
PF: predicated region fallthrough
CT: control target
= control target key end

     0   :  { %16 = vsyncpa [#allocation4], 0  ;;  %s1516_s0 = inlined_call_operand.vmem [shape: f32[16,16], index: 0, kind: input, shape index: {}]   ;;  %s1517_s1 = inlined_call_operand.hbm [shape: f32[2,32], index: 1, kind: input, shape index: {}]   ;;  %s1518_s2 = inlined_call_operand.hbm [shape: f32[2,32], index: 2, kind: input, shape index: {}]   ;;  %s1519_s3 = inlined_call_operand.vmem [shape: bf16[16,128], index: 3, kind: input, shape index: {}]   ;;  %s1520_s4 = inlined_call_operand.hbm [shape: bf16[32,128], index: 4, kind: input, shape index: {}]   ;;  %s1521_s5 = inlined_call_operand.vmem [shape: f32[1,128], index: 5, kind: input, shape index: {}]   ;;  %s1522_s6 = inlined_call_operand.vmem [shape: bf16[32,8], index: 6, kind: input, shape index: {}]   ;;  %s1523_s7 = inlined_call_operand.vmem [shape: f32[1,8], index: 7, kind: input, shape index: {}]   ;;  %s1524_s8 = inlined_call_operand.vmem [shape: f32[16,8], index: 8, kind: output, shape index: {0}]   ;;  %s1525_s9 = inlined_call_operand.hbm [shape: f32[2,32], index: 9, kind: output, shape index: {1}]   ;;  %s1526_s10 = inlined_call_operand.hbm [shape: f32[2,32], index: 10, kind: output, shape index: {2}]  }
   0x1   :  { %17 = vsyncpa [#allocation7], 0 }
   0x2   :  { %18 = vsyncpa [#allocation5], 0 }
   0x3   :  { %19 = vsyncpa [#allocation11], 0  ;;  %s1252_s13 = smov [#allocation6]   ;;  %s1253_s15 = smov [#allocation3]  }
   0x4   :  { %s38_s14 = sshll.u32 %s1252_s13, 4  ;;  %s28_s16 = sshll.u32 %s1253_s15, 4  ;;  %s39_s14 = int_to_ptr.vmem [resolvable:$true] %s38_s14  ;;  %s29_s16 = int_to_ptr.vmem [resolvable:$true] %s28_s16 }
   0x5   :  { %s1152_s17 = scalar_lea.vmem %s39_s14, 32  ;;  %p1157_p1 = scmp.lt.s32.totalorder %s39_s14, %s39_s14 }
   0x6   :  { %p1153_p0 = scmp.ne.s32.totalorder %s39_s14, %s1152_s17  ;;  %p1158_p2 = scmp.lt.s32.totalorder %s1152_s17, %s1152_s17 }
   0x8   :  { %p1159_p3 = por %p1158_p2, %p1157_p1 }
   0xa   :  { %p1160_p4 = pnand %p1159_p3, %p1153_p0 }
   0xc   :  { %1163 = shalt.err (!%p1160_p4)
}
   0xd   :  { %41 = dma.hbm_to_vmem [thread:$0]  %s1518_s2, 32, %s39_s14, [#allocation7]  }
   0xe   :  { %s1172_s20 = scalar_lea.vmem %s29_s16, 32  ;;  %p1177_p6 = scmp.lt.s32.totalorder %s29_s16, %s29_s16 }
   0xf   :  { %p1173_p5 = scmp.ne.s32.totalorder %s29_s16, %s1172_s20  ;;  %p1178_p7 = scmp.lt.s32.totalorder %s1172_s20, %s1172_s20 }
  0x11   :  { %p1179_p8 = por %p1178_p7, %p1177_p6 }
  0x13   :  { %p1180_p9 = pnand %p1179_p8, %p1173_p5 }
  0x15   :  { %1183 = shalt.err (!%p1180_p9)
}
  0x16   :  { %31 = dma.hbm_to_vmem [thread:$0]  %s1517_s1, 32, %s29_s16, [#allocation4]  }
  0x17   :  { %s1254_s23 = smov [#allocation8]  }
  0x18   :  { %s49_s24 = sshll.u32 %s1254_s23, 4  ;;  %s50_s24 = int_to_ptr.vmem [resolvable:$true] %s49_s24 }
  0x19   :  { %s1192_s25 = scalar_lea.vmem %s50_s24, 256  ;;  %p1197_p11 = scmp.lt.s32.totalorder %s50_s24, %s50_s24 }
  0x1a   :  { %p1193_p10 = scmp.ne.s32.totalorder %s50_s24, %s1192_s25  ;;  %p1198_p12 = scmp.lt.s32.totalorder %s1192_s25, %s1192_s25 }
  0x1c   :  { %p1199_p13 = por %p1198_p12, %p1197_p11 }
  0x1e   :  { %p1200_p0 = pnand %p1199_p13, %p1193_p10 }
  0x20   :  { %1203 = shalt.err (!%p1200_p0)
}
  0x21   :  { %s1255_s2 = smov 64   ;;  %s1256_s26 = smov 4  }
  0x22   :  { %55 = dma.hbm_to_vmem [thread:$0]  %s1520_s4, 256, %s50_s24, [#allocation7], %s1255_s2, %s1255_s2, %s1256_s26  }
  0x23   :  { %1244 = dma.done.wait [#allocation4], 32  }
  0x24   :  { %1245 = vsyncadd [#allocation4], 4294967264 }
  0x25   :  { %1246 = dma.done.wait [#allocation7], 288  }
  0x26   :  { %1247 = vsyncadd [#allocation7], 4294967008  ;;  %v1257_v0 = vmov 0.0   ;;  %vm1258_vm0 = vmmov 0   ;;  %v1075_v1 = vld [vmem:[%s1519_s3] sm:$0xff]   ;;  %v80_v4 = vld [vmem:[%s1516_s0 + $0x8] sm:$0xff] }
  0x27   :  { %986 = vmatprep.subr.bf16.mxu0 %v1257_v0  ;;  %992 = vmatprep.subr.bf16.mxu1 %v1257_v0  ;;  %v1338_v2 = vld [vmem:[#allocation8 + $0x8] sm:$0xff]   ;;  %vm94_vm1 = vcmask 130048   ;;  %v1347_v6 = vld [vmem:[#allocation8] sm:$0xff]   ;;  %v139_v7 = vld [vmem:[#allocation3] sm:$0x3]  ;;  %vm154_vm2 = vcmask 261120  }
  0x28   :  { %988 = vmatprep.mubr.msk.bf16.mxu0 %vm1258_vm0, %v1257_v0  ;;  %996 = vmatprep.mubr.msk.bf16.mxu1 %vm1258_vm0, %v1257_v0  ;;  %v79_v3 = vld [vmem:[%s1516_s0] sm:$0xff]  ;;  %v141_v8 = vpack.c.bf16 %v139_v7, %v139_v7  ;;  %v140_v22 = vld [vmem:[#allocation6] sm:$0x3]  ;;  %vm231_vm3 = vcmask 254976   ;;  %s1260_s13 = smov 96   ;;  %vm400_vm4 = vcmask 259076  }
  0x29   :  { %987 = vmatpush3.bf16.msra.mxu0 %v1075_v1  ;;  %993 = vmatpush3.bf16.msra.mxu1 %v1338_v2  ;;  %v81_v5 = vpack.c.bf16 %v80_v4, %v79_v3  ;;  %v932_v9 = vld [vmem:[%s1521_s5] ss:$0 sm:$0xff]  ;;  %s1259_s5 = smov 32   ;;  %vm485_vm5 = vcmask 261126   ;;  %vm315_vm6 = vcmask 257026   ;;  %s1262_s19 = smov [#allocation10]  }
  0x2a   :  { %1000 = vmatprep.subr.bf16.mxu0 %v1257_v0  ;;  %994 = vmatprep.subr.bf16.mxu1 %v1257_v0  ;;  %s916_s20 = sshll.u32 %s1262_s19, 4  ;;  %s917_s20 = int_to_ptr.vmem [resolvable:$true] %s916_s20 }
  0x2c   :  { %989 = vmatmul.mubr.msk.bf16.vlgmr.msra.gmra.mxu0 %vm94_vm1, %v81_v5 }
  0x2d   :  { %1001 = vmatpush3.bf16.msra.mxu0 %v1338_v2  ;;  %1004 = vmatprep.mubr.msk.bf16.mxu0 %vm1258_vm0, %v1257_v0 }
  0x2e   :  { %995 = vmatpush3.bf16.msra.mxu1 %v1347_v6  ;;  %1002 = vmatprep.subr.bf16.mxu0 %v1257_v0 }
  0x2f   :  { %1008 = vmatprep.subr.bf16.mxu1 %v1257_v0 }
  0x31   :  { %997 = vmatmul.mubr.msk.bf16.vlgmr.msra.gmra.mxu1 %vm154_vm2, %v141_v8  ;;  %1003 = vmatpush3.bf16.msra.mxu0 %v1347_v6 }
  0x32   :  { %1009 = vmatpush3.bf16.msra.mxu1 %v1338_v2  ;;  %1012 = vmatprep.mubr.msk.bf16.mxu1 %vm1258_vm0, %v1257_v0 }
  0x33   :  { %1010 = vmatprep.subr.bf16.mxu1 %v1257_v0  ;;  %1016 = vmatprep.subr.bf16.mxu0 %v1257_v0 }
  0x36   :  { %1011 = vmatpush3.bf16.msra.mxu1 %v1347_v6 }
  0x37   :  { %1024 = vmatprep.subr.bf16.mxu1 %v1257_v0 }
  0xec   :  { %v132_v10 = vpop.f32.mrf.mxu0 }
  0xed   :  { %v1369_v11 = vadd.f32 %v932_v9, %v132_v10 }
  0xee   :  { %v990_v12 = vpop.f32.mrf.mxu0 }
  0xf0   :  { %v135_v13 = vpop.f32.mrf.mxu0 }
  0xf1   :  { %v1371_v14 = vadd.f32 %v932_v9, %v135_v13  ;;  %v192_v15 = vpop.f32.mrf.mxu1 }
  0xf2   :  { %v198_v16 = vadd.f32 %v192_v15, %v1369_v11  ;;  %v991_v17 = vpop.f32.mrf.mxu0 }
  0xf3   :  { %v998_v18 = vpop.f32.mrf.mxu1 }
  0xf4   :  { %1080 = vtanh.f32 %v198_v16  ;;  %v938_v23 = vmul.f32 -1.442695, %v198_v16 }
  0xf5   :  { %v195_v19 = vpop.f32.mrf.mxu1 }
  0xf6   :  { %1082 = vpow2.f32 %v938_v23 }
  0xf7   :  { %v999_v20 = vpop.f32.mrf.mxu1 }
 0x101   :  { %v1081_v21 = vpop.eup %1080 }
 0x102   :  { %212 = vrot.lane.b32.xlu0 %v1081_v21, %s1255_s2 }
 0x103   :  { %v1083_v24 = vpop.eup %1082 }
 0x104   :  { %v202_v25 = vadd.f32 1.0, %v1083_v24 }
 0x106   :  { %207 = vrot.lane.b32.xlu0 %v140_v22, %s1259_s5  ;;  %1084 = vrcp.f32 %v202_v25 }
 0x113   :  { %v1085_v26 = vpop.eup %1084 }
 0x174   :  { %v213_v27 = vpop.permute.xlu0 %212 }
 0x175   :  { %v215_v28 = vmul.f32 %v1085_v26, %v213_v27 }
 0x177   :  { %217 = vrot.lane.b32.xlu1 %v215_v28, %s1259_s5 }
 0x178   :  { %v208_v29 = vpop.permute.xlu0 %207 }
 0x179   :  { %v210_v30 = vmul.f32 %v1085_v26, %v208_v29 }
 0x1e9   :  { %v218_v31 = vpop.permute.xlu1 %217 }
 0x1ea   :  { %v220_v32 = vadd.f32 %v218_v31, %v210_v30 }
 0x1ec   :  { %1086 = vtanh.f32 %v220_v32  ;;  %v292_v51 = vrot.slane %v220_v32, 6 }
 0x1f9   :  { %v1087_v33 = vpop.eup %1086 }
 0x1fa   :  { %223 = vrot.lane.b32.xlu1 %v1087_v33, %s1255_s2 }
 0x26c   :  { %v224_v34 = vpop.permute.xlu1 %223 }
 0x26d   :  { %v1378_v35 = vmul.f32 %v1085_v26, %v224_v34 }
 0x26f   :  { %v233_v36 = vpack.c.bf16 %v1378_v35, %v1378_v35 }
 0x271   :  { %235 = vrot.lane.b32.xlu0 %v233_v36, %s1259_s5 }
 0x2e3   :  { %v236_v37 = vpop.permute.xlu0 %235 }
 0x2e4   :  { %1005 = vmatmul.mubr.msk.bf16.vlgmr.msra.gmra.mxu0 %vm154_vm2, %v236_v37 }
 0x2e5   :  { %1017 = vmatpush3.bf16.msra.mxu0 %v1338_v2  ;;  %1020 = vmatprep.mubr.msk.bf16.mxu0 %vm1258_vm0, %v1257_v0 }
 0x2e6   :  { %1018 = vmatprep.subr.bf16.mxu0 %v1257_v0 }
 0x2e9   :  { %1019 = vmatpush3.bf16.msra.mxu0 %v1347_v6 }
 0x2ea   :  { %1032 = vmatprep.subr.bf16.mxu0 %v1257_v0 }
 0x3a4   :  { %v274_v38 = vpop.f32.mrf.mxu0 }
 0x3a5   :  { %v281_v39 = vrot.slane %v274_v38, 6 }
 0x3a6   :  { %v1006_v40 = vpop.f32.mrf.mxu0 }
 0x3a7   :  { %v283_v41 = vadd.f32 %v281_v39, %v1369_v11 }
 0x3a8   :  { %v277_v42 = vpop.f32.mrf.mxu0 }
 0x3a9   :  { %1088 = vtanh.f32 %v283_v41  ;;  %v940_v45 = vmul.f32 -1.442695, %v283_v41 }
 0x3aa   :  { %v1007_v43 = vpop.f32.mrf.mxu0 }
 0x3ab   :  { %1090 = vpow2.f32 %v940_v45 }
 0x3b6   :  { %v1089_v44 = vpop.eup %1088 }
 0x3b7   :  { %296 = vrot.lane.b32.xlu1 %v1089_v44, %s1255_s2 }
 0x3b8   :  { %v1091_v46 = vpop.eup %1090 }
 0x3b9   :  { %v287_v47 = vadd.f32 1.0, %v1091_v46 }
 0x3bb   :  { %1092 = vrcp.f32 %v287_v47 }
 0x3c8   :  { %v1093_v48 = vpop.eup %1092 }
 0x3c9   :  { %v294_v52 = vmul.f32 %v1093_v48, %v292_v51 }
 0x429   :  { %v297_v49 = vpop.permute.xlu1 %296 }
 0x42a   :  { %v299_v50 = vmul.f32 %v1093_v48, %v297_v49 }
 0x42c   :  { %301 = vrot.lane.b32.xlu0 %v299_v50, %s1259_s5 }
 0x49e   :  { %v302_v53 = vpop.permute.xlu0 %301 }
 0x49f   :  { %v304_v54 = vadd.f32 %v302_v53, %v294_v52 }
 0x4a1   :  { %1094 = vtanh.f32 %v304_v54  ;;  %v377_v15 = vrot.slane %v304_v54, 6 }
 0x4ae   :  { %v1095_v55 = vpop.eup %1094 }
 0x4af   :  { %307 = vrot.lane.b32.xlu1 %v1095_v55, %s1255_s2 }
 0x521   :  { %v308_v56 = vpop.permute.xlu1 %307 }
 0x522   :  { %v1394_v57 = vmul.f32 %v1093_v48, %v308_v56 }
 0x524   :  { %v317_v58 = vpack.c.bf16 %v1394_v57, %v1394_v57 }
 0x526   :  { %v319_v59 = vrot.slane %v317_v58, 1 }
 0x528   :  { %320 = vrot.lane.b32.xlu0 %v319_v59, %s1259_s5 }
 0x59a   :  { %v321_v60 = vpop.permute.xlu0 %320 }
 0x59b   :  { %1013 = vmatmul.mubr.msk.bf16.vlgmr.msra.gmra.mxu1 %vm154_vm2, %v321_v60 }
 0x59c   :  { %1025 = vmatpush3.bf16.msra.mxu1 %v1338_v2  ;;  %1028 = vmatprep.mubr.msk.bf16.mxu1 %vm1258_vm0, %v1257_v0 }
 0x59d   :  { %1026 = vmatprep.subr.bf16.mxu1 %v1257_v0 }
 0x5a0   :  { %1027 = vmatpush3.bf16.msra.mxu1 %v1347_v6 }
 0x5a1   :  { %1040 = vmatprep.subr.bf16.mxu1 %v1257_v0 }
 0x65b   :  { %v359_v61 = vpop.f32.mrf.mxu1 }
 0x65c   :  { %v366_v62 = vrot.slane %v359_v61, 4 }
 0x65d   :  { %v1014_v63 = vpop.f32.mrf.mxu1 }
 0x65e   :  { %v368_v1 = vadd.f32 %v366_v62, %v1369_v11 }
 0x65f   :  { %v362_v3 = vpop.f32.mrf.mxu1 }
 0x660   :  { %1096 = vtanh.f32 %v368_v1  ;;  %v942_v7 = vmul.f32 -1.442695, %v368_v1 }
 0x661   :  { %v1015_v4 = vpop.f32.mrf.mxu1 }
 0x662   :  { %1098 = vpow2.f32 %v942_v7 }
 0x66d   :  { %v1097_v5 = vpop.eup %1096 }
 0x66e   :  { %381 = vrot.lane.b32.xlu1 %v1097_v5, %s1255_s2 }
 0x66f   :  { %v1099_v8 = vpop.eup %1098 }
 0x670   :  { %v372_v9 = vadd.f32 1.0, %v1099_v8 }
 0x672   :  { %1100 = vrcp.f32 %v372_v9 }
 0x67f   :  { %v1101_v10 = vpop.eup %1100 }
 0x680   :  { %v379_v16 = vmul.f32 %v1101_v10, %v377_v15 }
 0x6e0   :  { %v382_v12 = vpop.permute.xlu1 %381 }
 0x6e1   :  { %v384_v13 = vmul.f32 %v1101_v10, %v382_v12 }
 0x6e3   :  { %386 = vrot.lane.b32.xlu0 %v384_v13, %s1259_s5 }
 0x755   :  { %v387_v17 = vpop.permute.xlu0 %386 }
 0x756   :  { %v389_v18 = vadd.f32 %v387_v17, %v379_v16 }
 0x758   :  { %1102 = vtanh.f32 %v389_v18  ;;  %v462_v39 = vrot.slane %v389_v18, 6 }
 0x765   :  { %v1103_v19 = vpop.eup %1102 }
 0x766   :  { %392 = vrot.lane.b32.xlu1 %v1103_v19, %s1255_s2 }
 0x7d8   :  { %v393_v20 = vpop.permute.xlu1 %392 }
 0x7d9   :  { %v1410_v21 = vmul.f32 %v1101_v10, %v393_v20 }
 0x7db   :  { %v402_v22 = vpack.c.bf16 %v1410_v21, %v1410_v21 }
 0x7dd   :  { %v404_v23 = vrot.slane %v402_v22, 2 }
 0x7df   :  { %405 = vrot.lane.b32.xlu0 %v404_v23, %s1259_s5 }
 0x851   :  { %v406_v24 = vpop.permute.xlu0 %405 }
 0x852   :  { %1021 = vmatmul.mubr.msk.bf16.vlgmr.msra.gmra.mxu0 %vm154_vm2, %v406_v24 }
 0x853   :  { %1033 = vmatpush3.bf16.msra.mxu0 %v1338_v2  ;;  %1036 = vmatprep.mubr.msk.bf16.mxu0 %vm1258_vm0, %v1257_v0 }
 0x854   :  { %1034 = vmatprep.subr.bf16.mxu0 %v1257_v0 }
 0x857   :  { %1035 = vmatpush3.bf16.msra.mxu0 %v1347_v6 }
 0x858   :  { %1048 = vmatprep.subr.bf16.mxu0 %v1257_v0 }
 0x912   :  { %v444_v25 = vpop.f32.mrf.mxu0 }
 0x913   :  { %v451_v26 = vrot.slane %v444_v25, 2 }
 0x914   :  { %v1022_v27 = vpop.f32.mrf.mxu0 }
 0x915   :  { %v453_v28 = vadd.f32 %v451_v26, %v1369_v11 }
 0x916   :  { %v447_v29 = vpop.f32.mrf.mxu0 }
 0x917   :  { %1104 = vtanh.f32 %v453_v28  ;;  %v944_v32 = vmul.f32 -1.442695, %v453_v28 }
 0x918   :  { %v1023_v30 = vpop.f32.mrf.mxu0 }
 0x919   :  { %1106 = vpow2.f32 %v944_v32 }
 0x924   :  { %v1105_v31 = vpop.eup %1104 }
 0x925   :  { %466 = vrot.lane.b32.xlu1 %v1105_v31, %s1255_s2 }
 0x926   :  { %v1107_v33 = vpop.eup %1106 }
 0x927   :  { %v457_v34 = vadd.f32 1.0, %v1107_v33 }
 0x929   :  { %1108 = vrcp.f32 %v457_v34 }
 0x936   :  { %v1109_v36 = vpop.eup %1108 }
 0x937   :  { %v464_v40 = vmul.f32 %v1109_v36, %v462_v39 }
 0x997   :  { %v467_v37 = vpop.permute.xlu1 %466 }
 0x998   :  { %v469_v38 = vmul.f32 %v1109_v36, %v467_v37 }
 0x99a   :  { %471 = vrot.lane.b32.xlu0 %v469_v38, %s1259_s5 }
 0xa0c   :  { %v472_v41 = vpop.permute.xlu0 %471 }
 0xa0d   :  { %v474_v11 = vadd.f32 %v472_v41, %v464_v40 }
 0xa0f   :  { %1110 = vtanh.f32 %v474_v11  ;;  %v544_v61 = vrot.slane %v474_v11, 6 }
 0xa1c   :  { %v1111_v42 = vpop.eup %1110 }
 0xa1d   :  { %477 = vrot.lane.b32.xlu1 %v1111_v42, %s1255_s2 }
 0xa8f   :  { %v478_v43 = vpop.permute.xlu1 %477 }
 0xa90   :  { %v1426_v44 = vmul.f32 %v1109_v36, %v478_v43 }
 0xa92   :  { %v487_v45 = vpack.c.bf16 %v1426_v44, %v1426_v44 }
 0xa94   :  { %v489_v46 = vrot.slane %v487_v45, 3 }
 0xa96   :  { %490 = vrot.lane.b32.xlu0 %v489_v46, %s1259_s5 }
 0xb08   :  { %v491_v47 = vpop.permute.xlu0 %490 }
 0xb09   :  { %1029 = vmatmul.mubr.msk.bf16.vlgmr.msra.gmra.mxu1 %vm154_vm2, %v491_v47 }
 0xb0a   :  { %1041 = vmatpush3.bf16.msra.mxu1 %v1338_v2  ;;  %1044 = vmatprep.mubr.msk.bf16.mxu1 %vm1258_vm0, %v1257_v0 }
 0xb0b   :  { %1042 = vmatprep.subr.bf16.mxu1 %v1257_v0 }
 0xb0e   :  { %1043 = vmatpush3.bf16.msra.mxu1 %v1347_v6 }
 0xb0f   :  { %1056 = vmatprep.subr.bf16.mxu1 %v1257_v0 }
 0xbc9   :  { %v529_v48 = vpop.f32.mrf.mxu1 }
 0xbca   :  { %v535_v49 = vadd.f32 %v529_v48, %v1371_v14 }
 0xbcb   :  { %v1030_v50 = vpop.f32.mrf.mxu1 }
 0xbcc   :  { %1112 = vtanh.f32 %v535_v49  ;;  %v946_v54 = vmul.f32 -1.442695, %v535_v49 }
 0xbcd   :  { %v532_v51 = vpop.f32.mrf.mxu1 }
 0xbce   :  { %1114 = vpow2.f32 %v946_v54 }
 0xbcf   :  { %v1031_v52 = vpop.f32.mrf.mxu1 }
 0xbd9   :  { %v1113_v53 = vpop.eup %1112 }
 0xbda   :  { %548 = vrot.lane.b32.xlu1 %v1113_v53, %s1255_s2 }
 0xbdb   :  { %v1115_v55 = vpop.eup %1114 }
 0xbdc   :  { %v539_v56 = vadd.f32 1.0, %v1115_v55 }
 0xbde   :  { %1116 = vrcp.f32 %v539_v56 }
 0xbeb   :  { %v1117_v58 = vpop.eup %1116 }
 0xbec   :  { %v546_v62 = vmul.f32 %v1117_v58, %v544_v61 }
 0xc4c   :  { %v549_v59 = vpop.permute.xlu1 %548 }
 0xc4d   :  { %v551_v60 = vmul.f32 %v1117_v58, %v549_v59 }
 0xc4f   :  { %553 = vrot.lane.b32.xlu0 %v551_v60, %s1259_s5 }
 0xcc1   :  { %v554_v63 = vpop.permute.xlu0 %553 }
 0xcc2   :  { %v556_v1 = vadd.f32 %v554_v63, %v546_v62 }
 0xcc4   :  { %1118 = vtanh.f32 %v556_v1 }
 0xcd1   :  { %v1119_v3 = vpop.eup %1118 }
 0xcd2   :  { %559 = vrot.lane.b32.xlu1 %v1119_v3, %s1255_s2 }
 0xd44   :  { %v560_v4 = vpop.permute.xlu1 %559 }
 0xd45   :  { %v1442_v5 = vmul.f32 %v1117_v58, %v560_v4 }
 0xd47   :  { %v568_v7 = vpack.c.bf16 %v1442_v5, %v1442_v5 }
 0xd49   :  { %570 = vrot.lane.b32.xlu0 %v568_v7, %s1259_s5 }
 0xdbb   :  { %v571_v8 = vpop.permute.xlu0 %570 }
 0xdbc   :  { %1037 = vmatmul.mubr.msk.bf16.vlgmr.msra.gmra.mxu0 %vm154_vm2, %v571_v8 }
 0xdbd   :  { %1049 = vmatpush3.bf16.msra.mxu0 %v1338_v2  ;;  %1052 = vmatprep.mubr.msk.bf16.mxu0 %vm1258_vm0, %v1257_v0 }
 0xdbe   :  { %1050 = vmatprep.subr.bf16.mxu0 %v1257_v0 }
 0xdc1   :  { %1051 = vmatpush3.bf16.msra.mxu0 %v1347_v6  ;;  %v627_v6 = vrot.slane %v556_v1, 6 }
 0xe7c   :  { %v609_v9 = vpop.f32.mrf.mxu0 }
 0xe7d   :  { %v616_v10 = vrot.slane %v609_v9, 6 }
 0xe7e   :  { %v1038_v12 = vpop.f32.mrf.mxu0 }
 0xe7f   :  { %v618_v13 = vadd.f32 %v616_v10, %v1371_v14 }
 0xe80   :  { %v612_v15 = vpop.f32.mrf.mxu0 }
 0xe81   :  { %1120 = vtanh.f32 %v618_v13  ;;  %v948_v18 = vmul.f32 -1.442695, %v618_v13 }
 0xe82   :  { %v1039_v16 = vpop.f32.mrf.mxu0 }
 0xe83   :  { %1122 = vpow2.f32 %v948_v18 }
 0xe8e   :  { %v1121_v17 = vpop.eup %1120 }
 0xe8f   :  { %631 = vrot.lane.b32.xlu1 %v1121_v17, %s1255_s2 }
 0xe90   :  { %v1123_v2 = vpop.eup %1122 }
 0xe91   :  { %v622_v19 = vadd.f32 1.0, %v1123_v2  ;;  %v1078_v2 = vld [vmem:[%s1522_s6 + $0x8] sm:$0xff]  }
 0xe93   :  { %1124 = vrcp.f32 %v622_v19  ;;  %v1079_v19 = vld [vmem:[%s1522_s6] sm:$0xff]   ;;  %s1261_s6 = smov [#allocation9]  }
 0xe94   :  { %s906_s18 = sshll.u32 %s1261_s6, 4  ;;  %s907_s18 = int_to_ptr.vmem [resolvable:$true] %s906_s18 }
 0xe95   :  { %s1204_s21 = scalar_lea.vmem %s907_s18, 32  ;;  %p1209_p2 = scmp.lt.s32.totalorder %s907_s18, %s907_s18 }
 0xe96   :  { %p1205_p1 = scmp.ne.s32.totalorder %s907_s18, %s1204_s21  ;;  %p1210_p3 = scmp.lt.s32.totalorder %s1204_s21, %s1204_s21 }
 0xe98   :  { %p1211_p4 = por %p1210_p3, %p1209_p2 }
 0xe9a   :  { %p1212_p5 = pnand %p1211_p4, %p1205_p1 }
 0xea0   :  { %v1125_v20 = vpop.eup %1124 }
 0xea1   :  { %v629_v24 = vmul.f32 %v1125_v20, %v627_v6 }
 0xf01   :  { %v632_v22 = vpop.permute.xlu1 %631 }
 0xf02   :  { %v634_v23 = vmul.f32 %v1125_v20, %v632_v22 }
 0xf04   :  { %636 = vrot.lane.b32.xlu0 %v634_v23, %s1259_s5 }
 0xf76   :  { %v637_v25 = vpop.permute.xlu0 %636 }
 0xf77   :  { %v639_v26 = vadd.f32 %v637_v25, %v629_v24 }
 0xf79   :  { %1126 = vtanh.f32 %v639_v26  ;;  %v711_v47 = vrot.slane %v639_v26, 6 }
 0xf86   :  { %v1127_v27 = vpop.eup %1126 }
 0xf87   :  { %642 = vrot.lane.b32.xlu1 %v1127_v27, %s1255_s2 }
 0xff9   :  { %v643_v28 = vpop.permute.xlu1 %642 }
 0xffa   :  { %v1457_v29 = vmul.f32 %v1125_v20, %v643_v28 }
 0xffc   :  { %v651_v30 = vpack.c.bf16 %v1457_v29, %v1457_v29 }
 0xffe   :  { %v653_v31 = vrot.slane %v651_v30, 1 }
0x1000   :  { %654 = vrot.lane.b32.xlu0 %v653_v31, %s1259_s5 }
0x1072   :  { %v655_v32 = vpop.permute.xlu0 %654 }
0x1073   :  { %1045 = vmatmul.mubr.msk.bf16.vlgmr.msra.gmra.mxu1 %vm154_vm2, %v655_v32 }
0x1074   :  { %1060 = vmatprep.mubr.msk.bf16.mxu1 %vm1258_vm0, %v1257_v0  ;;  %1057 = vmatpush3.bf16.msra.mxu1 %v1078_v2 }
0x1075   :  { %1058 = vmatprep.subr.bf16.mxu1 %v1257_v0 }
0x1078   :  { %1059 = vmatpush3.bf16.msra.mxu1 %v1079_v19 }
0x1133   :  { %v693_v33 = vpop.f32.mrf.mxu1 }
0x1134   :  { %v700_v34 = vrot.slane %v693_v33, 4 }
0x1135   :  { %v1046_v36 = vpop.f32.mrf.mxu1 }
0x1136   :  { %v702_v37 = vadd.f32 %v700_v34, %v1371_v14 }
0x1137   :  { %v696_v38 = vpop.f32.mrf.mxu1 }
0x1138   :  { %1128 = vtanh.f32 %v702_v37  ;;  %v950_v41 = vmul.f32 -1.442695, %v702_v37 }
0x1139   :  { %v1047_v39 = vpop.f32.mrf.mxu1 }
0x113a   :  { %1130 = vpow2.f32 %v950_v41 }
0x1145   :  { %v1129_v40 = vpop.eup %1128 }
0x1146   :  { %715 = vrot.lane.b32.xlu1 %v1129_v40, %s1255_s2 }
0x1147   :  { %v1131_v11 = vpop.eup %1130 }
0x1148   :  { %v706_v42 = vadd.f32 1.0, %v1131_v11 }
0x114a   :  { %1132 = vrcp.f32 %v706_v42 }
0x1157   :  { %v1133_v43 = vpop.eup %1132 }
0x1158   :  { %v713_v48 = vmul.f32 %v1133_v43, %v711_v47 }
0x11b8   :  { %v716_v45 = vpop.permute.xlu1 %715 }
0x11b9   :  { %v718_v46 = vmul.f32 %v1133_v43, %v716_v45 }
0x11bb   :  { %720 = vrot.lane.b32.xlu0 %v718_v46, %s1259_s5 }
0x122d   :  { %v721_v49 = vpop.permute.xlu0 %720 }
0x122e   :  { %v723_v50 = vadd.f32 %v721_v49, %v713_v48 }
0x1230   :  { %1134 = vtanh.f32 %v723_v50 }
0x123d   :  { %v1135_v51 = vpop.eup %1134 }
0x123e   :  { %726 = vrot.lane.b32.xlu1 %v1135_v51, %s1255_s2 }
0x12b0   :  { %v727_v52 = vpop.permute.xlu1 %726 }
0x12b1   :  { %v729_v53 = vmul.f32 %v1133_v43, %v727_v52 }
0x12b3   :  { %v735_v54 = vpack.c.bf16 %v729_v53, %v729_v53 }
0x12b5   :  { %v737_v55 = vrot.slane %v735_v54, 2 }
0x12b7   :  { %738 = vrot.lane.b32.xlu0 %v737_v55, %s1259_s5 }
0x1329   :  { %v739_v56 = vpop.permute.xlu0 %738 }
0x132a   :  { %1053 = vmatmul.mubr.msk.bf16.vlgmr.msra.gmra.mxu0 %vm154_vm2, %v739_v56 }
0x13ea   :  { %v777_v58 = vpop.f32.mrf.mxu0 }
0x13eb   :  { %v784_v59 = vrot.slane %v777_v58, 2 }
0x13ec   :  { %v1054_v60 = vpop.f32.mrf.mxu0 }
0x13ed   :  { %v786_v61 = vadd.f32 %v784_v59, %v1371_v14  ;;  %v795_v14 = vrot.slane %v723_v50, 6 }
0x13ee   :  { %v780_v62 = vpop.f32.mrf.mxu0 }
0x13ef   :  { %1136 = vtanh.f32 %v786_v61  ;;  %v952_v3 = vmul.f32 -1.442695, %v786_v61 }
0x13f0   :  { %v1055_v63 = vpop.f32.mrf.mxu0 }
0x13f1   :  { %1138 = vpow2.f32 %v952_v3 }
0x13fc   :  { %v1137_v1 = vpop.eup %1136 }
0x13fd   :  { %799 = vrot.lane.b32.xlu1 %v1137_v1, %s1255_s2 }
0x13fe   :  { %v1139_v4 = vpop.eup %1138 }
0x13ff   :  { %v790_v7 = vadd.f32 1.0, %v1139_v4 }
0x1401   :  { %1140 = vrcp.f32 %v790_v7 }
0x140e   :  { %v1141_v8 = vpop.eup %1140 }
0x140f   :  { %v797_v12 = vmul.f32 %v1141_v8, %v795_v14 }
0x146f   :  { %v800_v9 = vpop.permute.xlu1 %799 }
0x1470   :  { %v802_v10 = vmul.f32 %v1141_v8, %v800_v9 }
0x1472   :  { %804 = vrot.lane.b32.xlu0 %v802_v10, %s1259_s5 }
0x1476   :  { %228 = vrot.lane.b32.xlu0 %v1378_v35, %s1259_s5 }
0x147a   :  { %397 = vrot.lane.b32.xlu0 %v1410_v21, %s1259_s5 }
0x147e   :  { %564 = vrot.lane.b32.xlu0 %v1442_v5, %s1259_s5 }
0x1482   :  { %731 = vrot.lane.b32.xlu0 %v729_v53, %s1259_s5 }
0x14e4   :  { %v805_v13 = vpop.permute.xlu0 %804 }
0x14e5   :  { %v807_v15 = vadd.f32 %v805_v13, %v797_v12 }
0x14e7   :  { %1142 = vtanh.f32 %v807_v15  ;;  %894 = vrot.lane.b32.xlu0 %v807_v15, %s1260_s13 }
0x14e8   :  { %v229_v16 = vpop.permute.xlu0 %228 }
0x14e9   :  { %232 = vst.msk [vmem:[#allocation2] sm:$0x3] %vm231_vm3, %v229_v16 }
0x14ec   :  { %v398_v35 = vpop.permute.xlu0 %397 }
0x14ed   :  { %401 = vst.msk [vmem:[#allocation2] sm:$0x30] %vm400_vm4, %v398_v35 }
0x14f0   :  { %v565_v17 = vpop.permute.xlu0 %564 }
0x14f1   :  { %567 = vst.msk [vmem:[#allocation2 + $0x8] sm:$0x3] %vm231_vm3, %v565_v17 }
0x14f4   :  { %v1143_v21 = vpop.eup %1142  ;;  %v732_v18 = vpop.permute.xlu0 %731 }
0x14f5   :  { %734 = vst.msk [vmem:[#allocation2 + $0x8] sm:$0x30] %vm400_vm4, %v732_v18  ;;  %810 = vrot.lane.b32.xlu1 %v1143_v21, %s1255_s2 }
0x14f9   :  { %312 = vrot.lane.b32.xlu1 %v1394_v57, %s1259_s5 }
0x14fd   :  { %482 = vrot.lane.b32.xlu1 %v1426_v44, %s1259_s5 }
0x1501   :  { %647 = vrot.lane.b32.xlu1 %v1457_v29, %s1259_s5 }
0x1559   :  { %v895_v5 = vpop.permute.xlu0 %894 }
0x155a   :  { %897 = vst.msk [vmem:[#allocation10 - $0x6] sm:$0xc0] %vm485_vm5, %v895_v5 }
0x1567   :  { %v811_v57 = vpop.permute.xlu1 %810 }
0x1568   :  { %v813_v44 = vmul.f32 %v1141_v8, %v811_v57 }
0x156a   :  { %815 = vrot.lane.b32.xlu1 %v813_v44, %s1259_s5 }
0x156b   :  { %v313_v20 = vpop.permute.xlu1 %312 }
0x156c   :  { %316 = vst.msk [vmem:[#allocation2] sm:$0xc] %vm315_vm6, %v313_v20 }
0x156f   :  { %v483_v22 = vpop.permute.xlu1 %482 }
0x1570   :  { %486 = vst.msk [vmem:[#allocation2] sm:$0xc0] %vm485_vm5, %v483_v22 }
0x1573   :  { %v648_v23 = vpop.permute.xlu1 %647 }
0x1574   :  { %650 = vst.msk [vmem:[#allocation2 + $0x8] sm:$0xc] %vm315_vm6, %v648_v23 }
0x1577   :  { %v819_v24 = vld [vmem:[#allocation2] sm:$0xff] }
0x15dc   :  { %v816_v6 = vpop.permute.xlu1 %815 }
0x15dd   :  { %818 = vst.msk [vmem:[#allocation2 + $0x8] sm:$0xc0] %vm485_vm5, %v816_v6  ;;  %892 = vst.msk [vmem:[#allocation9 - $0x6] sm:$0xc0] %vm485_vm5, %v816_v6 }
0x15e4   :  { %v820_v0 = vld [vmem:[#allocation2 + $0x8] sm:$0xff] }
0x15e5   :  { %v821_v25 = vpack.c.bf16 %v820_v0, %v819_v24 }
0x15e7   :  { %1061 = vmatmul.mubr.msk.bf16.vlgmr.msra.gmra.mxu1 %vm154_vm2, %v821_v25 }
0x15e8   :  { %1215 = shalt.err (!%p1212_p5)
}
0x15e9   :  { %909 = dma.vmem_to_hbm [thread:$0]  %s907_s18, 32, %s1525_s9, [#allocation5]  }
0x15ea   :  { %s1224_s24 = scalar_lea.vmem %s917_s20, 32  ;;  %p1229_p7 = scmp.lt.s32.totalorder %s917_s20, %s917_s20 }
0x15eb   :  { %p1225_p6 = scmp.ne.s32.totalorder %s917_s20, %s1224_s24  ;;  %p1230_p8 = scmp.lt.s32.totalorder %s1224_s24, %s1224_s24 }
0x15ed   :  { %p1231_p9 = por %p1230_p8, %p1229_p7 }
0x15ef   :  { %p1232_p10 = pnand %p1231_p9, %p1225_p6 }
0x15f1   :  { %1235 = shalt.err (!%p1232_p10)
}
0x15f2   :  { %919 = dma.vmem_to_hbm [thread:$0]  %s917_s20, 32, %s1526_s10, [#allocation11]   ;;  %v953_v26 = vld [vmem:[%s1523_s7] ss:$0 sm:$0xff]  ;;  %vm889_vm7 = vcmask 64512  }
0x16a7   :  { %v882_v27 = vpop.f32.mrf.mxu1 }
0x16a8   :  { %v883_v28 = vadd.f32 %v953_v26, %v882_v27 }
0x16a9   :  { %v1062_v29 = vpop.f32.mrf.mxu1 }
0x16aa   :  { %890 = vst.msk [vmem:[%s1524_s8] sm:$0xff] %vm889_vm7, %v883_v28 }
0x16ab   :  { %v885_v30 = vpop.f32.mrf.mxu1 }
0x16ac   :  { %v886_v31 = vadd.f32 %v953_v26, %v885_v30 }
0x16ad   :  { %v1063_v32 = vpop.f32.mrf.mxu1 }
0x16ae   :  { %891 = vst.msk [vmem:[%s1524_s8 + $0x8] sm:$0xff] %vm889_vm7, %v886_v31 }
0x16af   :  { %1248 = dma.done.wait [#allocation5], 32  }
0x16b0   :  { %1249 = vsyncadd [#allocation5], 4294967264 }
0x16b1   :  { %1250 = dma.done.wait [#allocation11], 32  }
0x16b2   :  { %1251 = vsyncadd [#allocation11], 4294967264 }
0x16b3   :  { %928 = vsyncpa [#allocation4], 1 }
0x16b4   :  { %929 = vsyncpa [#allocation7], 1 }
0x16b5   :  { %930 = vsyncpa [#allocation5], 1 }
0x16b6   :  { %931 = vsyncpa [#allocation11], 1 }

</bundles_post_ra>
